<compile_context>
chip_gen: v5e
topology: v5e:2x2
jax: 0.10.0
libtpu: 0.0.40
codegen_flags: <defaults>
</compile_context>

<pallas_src>
import functools

import jax
import jax.numpy as jnp
from jax import lax
from jax.experimental import pallas as pl
from jax.experimental.pallas import tpu as pltpu


def _critic_kernel(x_ref,
                   w1_ref, b1_ref,
                   w2_ref, b2_ref,
                   w3_ref, b3_ref,
                   wo_ref, bo_ref,
                   v_ref,
                   *, act_dtype):
    """Fused 3x tanh(Linear) + value head on one untransposed batch tile.

    x_ref  : (bt, D_in) f32   state tile (batch rows as-is, no HBM transpose)
    w*_ref : bf16 weights (out, in); b*_ref: (H, 1) f32 bias columns
    wo_ref : (H, 1) f32 value-head column; bo_ref: (1,) f32 scalar in SMEM
    v_ref  : (1, bt) f32 lane-dense value row
    """
    mxu_dt = w1_ref.dtype                      # bf16 by default
    x = x_ref[...].astype(mxu_dt)              # (bt, D_in)

    # fc1: contract in-features of both operands -> (H, bt), batch on lanes.
    dn = (((1,), (1,)), ((), ()))
    a = lax.dot_general(w1_ref[...], x, dn, preferred_element_type=jnp.float32)
    h = jnp.tanh((a + b1_ref[...]).astype(act_dtype))                  # (H, bt)

    # fc2 / fc3: standard (H,H) @ (H,bt) MXU matmuls, f32 accumulation.
    a = jnp.dot(w2_ref[...], h.astype(mxu_dt), preferred_element_type=jnp.float32)
    h = jnp.tanh((a + b2_ref[...]).astype(act_dtype))

    a = jnp.dot(w3_ref[...], h.astype(mxu_dt), preferred_element_type=jnp.float32)
    h = jnp.tanh((a + b3_ref[...]).astype(act_dtype))

    # Value head: VPU broadcast-mul (act dtype) + sublane reduce (f32 acc),
    # keeping the MXU free and the result lane-dense.
    prod = h * wo_ref[...].astype(h.dtype)                             # (H, bt)
    v = jnp.sum(prod, axis=0, keepdims=True, dtype=jnp.float32) + bo_ref[0]
    v_ref[...] = v.astype(v_ref.dtype)                                 # (1, bt)


def _pick_batch_tile_blocks(n_blocks):
    """Choose tile size (in 128-row blocks): <= 2048 rows per tile, and >= 2
    grid steps whenever possible (v7x megacore), evenly dividing n_blocks."""
    if n_blocks <= 1:
        return 1
    cap = min(16, n_blocks // 2)        # 16 * 128 = 2048 rows max
    for bpt in range(cap, 0, -1):
        if n_blocks % bpt == 0:
            return bpt
    return 1


def _default_act_dtype():
    """bf16 elementwise (bias/tanh/head) on v6e/v7x; f32 on v5e and older."""
    try:
        kind = jax.devices()[0].device_kind.lower()
    except Exception:
        return jnp.float32
    if any(tag in kind for tag in ("v2", "v3", "v4", "v5")):
        return jnp.float32
    return jnp.bfloat16


def continuous_critic_forward(state, params, *, batch_tile=None, act_dtype=None):
    """state: (B, D_in) f32.  params: compute-layout dict.  Returns (B, 1) f32."""
    B, D_in = state.shape
    H, D_in_w = params["w1"].shape
    assert D_in_w == D_in, "w1 must be (hidden, input_dims)"
    if act_dtype is None:
        act_dtype = _default_act_dtype()

    # Ragged batches: pad up to a multiple of 128 (lane alignment), slice after.
    B_pad = ((B + 127) // 128) * 128
    if B_pad != B:
        state = jnp.pad(state, ((0, B_pad - B), (0, 0)))
    n_blocks = B_pad // 128

    if batch_tile is None:
        batch_tile = 128 * _pick_batch_tile_blocks(n_blocks)
    assert batch_tile % 128 == 0 and B_pad % batch_tile == 0, (
        "batch_tile must be a multiple of 128 dividing the padded batch")

    grid = (B_pad // batch_tile,)
    full = lambda shape: pl.BlockSpec(shape, lambda i: (0, 0))  # VMEM-resident

    kernel = functools.partial(_critic_kernel, act_dtype=act_dtype)

    v_row = pl.pallas_call(
        kernel,
        out_shape=jax.ShapeDtypeStruct((1, B_pad), jnp.float32),
        grid_spec=pltpu.PrefetchScalarGridSpec(
            num_scalar_prefetch=0,
            grid=grid,
            in_specs=[
                pl.BlockSpec((batch_tile, D_in), lambda i: (i, 0)),   # state tile
                full((H, D_in)), full((H, 1)),                        # fc1
                full((H, H)),    full((H, 1)),                        # fc2
                full((H, H)),    full((H, 1)),                        # fc3
                full((H, 1)),                                         # out weight
                pl.BlockSpec(memory_space=pltpu.MemorySpace.SMEM),    # out bias
            ],
            out_specs=pl.BlockSpec((1, batch_tile), lambda i: (0, i)),
        ),
        compiler_params=pltpu.CompilerParams(
            dimension_semantics=("parallel",),
        ),
    )(state,
      params["w1"], params["b1"],
      params["w2"], params["b2"],
      params["w3"], params["b3"],
      params["wo"], params["bo"])

    # (1, B_pad) lane-dense row -> (B_pad, 1) column, slice off padding rows.
    return v_row.reshape(B_pad, 1)[:B]


def init_params(key, input_dims, hidden_dims=128):
    """Deterministic synthetic init (PyTorch-Linear-like uniform fan-in bound),
    stored in compute layout, all f32."""
    ks = jax.random.split(key, 8)

    def lin(kw, kb, fan_in, fan_out):
        bound = 1.0 / jnp.sqrt(jnp.float32(fan_in))
        w = jax.random.uniform(kw, (fan_out, fan_in), jnp.float32, -bound, bound)
        b = jax.random.uniform(kb, (fan_out, 1), jnp.float32, -bound, bound)
        return w, b

    w1, b1 = lin(ks[0], ks[1], input_dims, hidden_dims)
    w2, b2 = lin(ks[2], ks[3], hidden_dims, hidden_dims)
    w3, b3 = lin(ks[4], ks[5], hidden_dims, hidden_dims)
    wo_pt, bo_pt = lin(ks[6], ks[7], hidden_dims, 1)   # (1, H), (1, 1)
    return dict(w1=w1, b1=b1, w2=w2, b2=b2, w3=w3, b3=b3,
                wo=wo_pt.T,              # (H, 1) column for the VPU value head
                bo=bo_pt.reshape(1))     # (1,) scalar


def to_kernel_params(p, mxu_dtype=jnp.bfloat16):
    """Cast the MXU-bound weights to bf16 (f32 accumulation stays in-kernel)."""
    q = dict(p)
    for k in ("w1", "w2", "w3"):
        q[k] = p[k].astype(mxu_dtype)
    return q


def _reference_forward(state, p):
    """Pure-JAX f32 reference, PyTorch semantics: x @ W.T + b."""
    h = jnp.tanh(state @ p["w1"].T + p["b1"].T)
    h = jnp.tanh(h @ p["w2"].T + p["b2"].T)
    h = jnp.tanh(h @ p["w3"].T + p["b3"].T)
    return h @ p["wo"] + p["bo"][None, :]


if __name__ == "__main__":
    key = jax.random.PRNGKey(0)
    k_params, k_state = jax.random.split(key)

    batch = 16          # intentionally ragged (< 128): exercises the padding path
    input_dims = 16
    hidden_dims = 128

    params_f32 = init_params(k_params, input_dims, hidden_dims)
    kernel_params = to_kernel_params(params_f32)          # bf16 MXU weights
    state = jax.random.normal(k_state, (batch, input_dims), jnp.float32)

    v = continuous_critic_forward(state, kernel_params)
    v = jax.block_until_ready(v)

    # Sanity check against a pure-f32 JAX reference (looser tolerance because
    # the kernel feeds the MXU bf16 inputs; accumulation is still f32).
    v_ref = jax.block_until_ready(_reference_forward(state, params_f32))
    assert v.shape == (batch, 1)
    assert jnp.allclose(v, v_ref, atol=3e-2, rtol=3e-2), (
        "max abs err = %s" % jnp.max(jnp.abs(v - v_ref)))

    print("KERNEL_OK")
</pallas_src>

<mosaic_0001>
module attributes {stable_mosaic.version = 11 : i64} {
  func.func @_critic_kernel(%arg0: i32, %arg1: memref<128x16xf32, #tpu.memory_space<vmem>>, %arg2: memref<128x16xbf16, #tpu.memory_space<vmem>>, %arg3: memref<128x1xf32, #tpu.memory_space<vmem>>, %arg4: memref<128x128xbf16, #tpu.memory_space<vmem>>, %arg5: memref<128x1xf32, #tpu.memory_space<vmem>>, %arg6: memref<128x128xbf16, #tpu.memory_space<vmem>>, %arg7: memref<128x1xf32, #tpu.memory_space<vmem>>, %arg8: memref<128x1xf32, #tpu.memory_space<vmem>>, %arg9: memref<1xf32, #tpu.memory_space<smem>>, %arg10: memref<1x128xf32, #tpu.memory_space<vmem>>) attributes {dimension_semantics = [#tpu.dimension_semantics<parallel>], iteration_bounds = array<i64: 1>, scalar_prefetch = 0 : i64, scratch_operands = 0 : i64, tpu.core_type = #tpu.core_type<tc>, window_params = [{transform_indices = @transform_0, window_bounds = array<i64: 128, 16>}, {pipeline_mode = #tpu.pipeline_mode<synchronous>, transform_indices = @transform_1, window_bounds = array<i64: 128, 16>}, {pipeline_mode = #tpu.pipeline_mode<synchronous>, transform_indices = @transform_2, window_bounds = array<i64: 128, 1>}, {pipeline_mode = #tpu.pipeline_mode<synchronous>, transform_indices = @transform_3, window_bounds = array<i64: 128, 128>}, {pipeline_mode = #tpu.pipeline_mode<synchronous>, transform_indices = @transform_4, window_bounds = array<i64: 128, 1>}, {pipeline_mode = #tpu.pipeline_mode<synchronous>, transform_indices = @transform_5, window_bounds = array<i64: 128, 128>}, {pipeline_mode = #tpu.pipeline_mode<synchronous>, transform_indices = @transform_6, window_bounds = array<i64: 128, 1>}, {pipeline_mode = #tpu.pipeline_mode<synchronous>, transform_indices = @transform_7, window_bounds = array<i64: 128, 1>}, {transform_indices = @transform_8, window_bounds = array<i64: 1>}, {transform_indices = @transform_9, window_bounds = array<i64: 1, 128>}]} {
    %c0 = arith.constant 0 : index
    %c0_0 = arith.constant 0 : index
    %0 = vector.load %arg1[%c0, %c0_0] : memref<128x16xf32, #tpu.memory_space<vmem>>, vector<128x16xf32>
    %1 = arith.truncf %0 : vector<128x16xf32> to vector<128x16xbf16>
    %c0_1 = arith.constant 0 : index
    %c0_2 = arith.constant 0 : index
    %2 = vector.load %arg2[%c0_1, %c0_2] : memref<128x16xbf16, #tpu.memory_space<vmem>>, vector<128x16xbf16>
    %cst = arith.constant dense<0.000000e+00> : vector<128x128xf32>
    %3 = tpu.matmul %2, %1, %cst {dimension_numbers = #tpu.dot_dimension_numbers<[1], [1], [0], [0], [0, 0, 1, 0], [], []>} : vector<128x16xbf16>, vector<128x16xbf16>, vector<128x128xf32> -> vector<128x128xf32>
    %c0_3 = arith.constant 0 : index
    %c0_4 = arith.constant 0 : index
    %4 = vector.load %arg3[%c0_3, %c0_4] : memref<128x1xf32, #tpu.memory_space<vmem>>, vector<128x1xf32>
    %5 = vector.broadcast %4 : vector<128x1xf32> to vector<128x128xf32>
    %6 = arith.addf %3, %5 : vector<128x128xf32>
    %7 = arith.truncf %6 : vector<128x128xf32> to vector<128x128xbf16>
    %8 = math.tanh %7 : vector<128x128xbf16>
    %c0_5 = arith.constant 0 : index
    %c0_6 = arith.constant 0 : index
    %9 = vector.load %arg4[%c0_5, %c0_6] : memref<128x128xbf16, #tpu.memory_space<vmem>>, vector<128x128xbf16>
    %cst_7 = arith.constant dense<0.000000e+00> : vector<128x128xf32>
    %10 = tpu.matmul %9, %8, %cst_7 {dimension_numbers = #tpu.dot_dimension_numbers<[1], [0], [0], [1], [0, 0, 1, 1], [], []>} : vector<128x128xbf16>, vector<128x128xbf16>, vector<128x128xf32> -> vector<128x128xf32>
    %c0_8 = arith.constant 0 : index
    %c0_9 = arith.constant 0 : index
    %11 = vector.load %arg5[%c0_8, %c0_9] : memref<128x1xf32, #tpu.memory_space<vmem>>, vector<128x1xf32>
    %12 = vector.broadcast %11 : vector<128x1xf32> to vector<128x128xf32>
    %13 = arith.addf %10, %12 : vector<128x128xf32>
    %14 = arith.truncf %13 : vector<128x128xf32> to vector<128x128xbf16>
    %15 = math.tanh %14 : vector<128x128xbf16>
    %c0_10 = arith.constant 0 : index
    %c0_11 = arith.constant 0 : index
    %16 = vector.load %arg6[%c0_10, %c0_11] : memref<128x128xbf16, #tpu.memory_space<vmem>>, vector<128x128xbf16>
    %cst_12 = arith.constant dense<0.000000e+00> : vector<128x128xf32>
    %17 = tpu.matmul %16, %15, %cst_12 {dimension_numbers = #tpu.dot_dimension_numbers<[1], [0], [0], [1], [0, 0, 1, 1], [], []>} : vector<128x128xbf16>, vector<128x128xbf16>, vector<128x128xf32> -> vector<128x128xf32>
    %c0_13 = arith.constant 0 : index
    %c0_14 = arith.constant 0 : index
    %18 = vector.load %arg7[%c0_13, %c0_14] : memref<128x1xf32, #tpu.memory_space<vmem>>, vector<128x1xf32>
    %19 = vector.broadcast %18 : vector<128x1xf32> to vector<128x128xf32>
    %20 = arith.addf %17, %19 : vector<128x128xf32>
    %21 = arith.truncf %20 : vector<128x128xf32> to vector<128x128xbf16>
    %22 = math.tanh %21 : vector<128x128xbf16>
    %c0_15 = arith.constant 0 : index
    %c0_16 = arith.constant 0 : index
    %23 = vector.load %arg8[%c0_15, %c0_16] : memref<128x1xf32, #tpu.memory_space<vmem>>, vector<128x1xf32>
    %24 = arith.truncf %23 : vector<128x1xf32> to vector<128x1xbf16>
    %25 = vector.broadcast %24 : vector<128x1xbf16> to vector<128x128xbf16>
    %26 = arith.mulf %22, %25 : vector<128x128xbf16>
    %27 = arith.extf %26 : vector<128x128xbf16> to vector<128x128xf32>
    %cst_17 = arith.constant dense<0.000000e+00> : vector<128xf32>
    %28 = vector.multi_reduction <add>, %27, %cst_17 [0] : vector<128x128xf32> to vector<128xf32>
    %29 = vector.shape_cast %28 : vector<128xf32> to vector<1x128xf32>
    %c0_18 = arith.constant 0 : index
    %30 = memref.load %arg9[%c0_18] : memref<1xf32, #tpu.memory_space<smem>>
    %31 = vector.broadcast %30 : f32 to vector<1x128xf32>
    %32 = arith.addf %29, %31 : vector<1x128xf32>
    %c0_19 = arith.constant 0 : index
    %c0_20 = arith.constant 0 : index
    %33 = vector.load %arg10[%c0_19, %c0_20] : memref<1x128xf32, #tpu.memory_space<vmem>>, vector<1x128xf32>
    tpu.vector_store %arg10[%c0_19, %c0_20], %32 {strides = array<i32>} : memref<1x128xf32, #tpu.memory_space<vmem>>, vector<1x128xf32>,
    return
  }
  func.func @transform_0(%arg0: i32) -> (i32, i32) {
    %c0_i32 = arith.constant 0 : i32
    %c0_i32_0 = arith.constant 0 : i32
    return %arg0, %c0_i32 : i32, i32
  }
  func.func @transform_1(%arg0: i32) -> (i32, i32) {
    %c0_i32 = arith.constant 0 : i32
    %c0_i32_0 = arith.constant 0 : i32
    %c0_i32_1 = arith.constant 0 : i32
    return %c0_i32, %c0_i32_0 : i32, i32
  }
  func.func @transform_2(%arg0: i32) -> (i32, i32) {
    %c0_i32 = arith.constant 0 : i32
    %c0_i32_0 = arith.constant 0 : i32
    %c0_i32_1 = arith.constant 0 : i32
    return %c0_i32, %c0_i32_0 : i32, i32
  }
  func.func @transform_3(%arg0: i32) -> (i32, i32) {
    %c0_i32 = arith.constant 0 : i32
    %c0_i32_0 = arith.constant 0 : i32
    %c0_i32_1 = arith.constant 0 : i32
    return %c0_i32, %c0_i32_0 : i32, i32
  }
  func.func @transform_4(%arg0: i32) -> (i32, i32) {
    %c0_i32 = arith.constant 0 : i32
    %c0_i32_0 = arith.constant 0 : i32
    %c0_i32_1 = arith.constant 0 : i32
    return %c0_i32, %c0_i32_0 : i32, i32
  }
  func.func @transform_5(%arg0: i32) -> (i32, i32) {
    %c0_i32 = arith.constant 0 : i32
    %c0_i32_0 = arith.constant 0 : i32
    %c0_i32_1 = arith.constant 0 : i32
    return %c0_i32, %c0_i32_0 : i32, i32
  }
  func.func @transform_6(%arg0: i32) -> (i32, i32) {
    %c0_i32 = arith.constant 0 : i32
    %c0_i32_0 = arith.constant 0 : i32
    %c0_i32_1 = arith.constant 0 : i32
    return %c0_i32, %c0_i32_0 : i32, i32
  }
  func.func @transform_7(%arg0: i32) -> (i32, i32) {
    %c0_i32 = arith.constant 0 : i32
    %c0_i32_0 = arith.constant 0 : i32
    %c0_i32_1 = arith.constant 0 : i32
    return %c0_i32, %c0_i32_0 : i32, i32
  }
  func.func @transform_8(%arg0: i32) -> i32 {
    %c0_i32 = arith.constant 0 : i32
    %c0_i32_0 = arith.constant 0 : i32
    return %c0_i32 : i32
  }
  func.func @transform_9(%arg0: i32) -> (i32, i32) {
    %c0_i32 = arith.constant 0 : i32
    %c0_i32_0 = arith.constant 0 : i32
    return %c0_i32, %arg0 : i32, i32
  }
}

</mosaic_0001>

<bundles_post_ra>
// kernel: tpu_custom_call.1
= control target key start
LH: loop header
LB: loop body
LE: loop exit
PB: predicated region body
PF: predicated region fallthrough
CT: control target
= control target key end

     0   :  { %v1447_v3 = vmov 0   ;;  %vm210_vm0 = vcmask 130048   ;;  %s1915_s0 = inlined_call_operand.vmem [shape: f32[128,16], index: 0, kind: input, shape index: {}]   ;;  %s1916_s1 = inlined_call_operand.vmem [shape: bf16[128,16], index: 1, kind: input, shape index: {}]   ;;  %s1917_s2 = inlined_call_operand.vmem [shape: f32[128,1], index: 2, kind: input, shape index: {}]   ;;  %s1918_s3 = inlined_call_operand.vmem [shape: bf16[128,128], index: 3, kind: input, shape index: {}]   ;;  %s1919_s4 = inlined_call_operand.vmem [shape: f32[128,1], index: 4, kind: input, shape index: {}]   ;;  %s1920_s5 = inlined_call_operand.vmem [shape: bf16[128,128], index: 5, kind: input, shape index: {}]   ;;  %s1921_s6 = inlined_call_operand.vmem [shape: f32[128,1], index: 6, kind: input, shape index: {}]   ;;  %s1922_s7 = inlined_call_operand.vmem [shape: f32[128,1], index: 7, kind: input, shape index: {}]   ;;  %s1923_s8 = inlined_call_operand.<no memory space> [shape: f32[1], index: 8, kind: input, shape index: {}]   ;;  %s1924_s9 = inlined_call_operand.hbm [shape: f32[1,128], index: 9, kind: output, shape index: {}]  }
   0x1   :  { %v88_v0 = vld [vmem:[%s1917_s2 + $0x70] sm:$0xff]  ;;  %v86_v1 = vld [vmem:[%s1917_s2 + $0x60] sm:$0xff]  ;;  %1324 = vset.pattern.permute.xlu2 %v1447_v3  ;;  %1323 = vset.pattern.permute.xlu1 %v1447_v3  ;;  %v49_v5 = vld [vmem:[%s1915_s0 + $0x78] sm:$0xff] }
   0x2   :  { %v84_v2 = vld [vmem:[%s1917_s2 + $0x50] sm:$0xff]  ;;  %1322 = vset.pattern.permute.xlu0 %v1447_v3  ;;  %152 = vperm.xlu1 %1323, %v86_v1   ;;  %v46_v7 = vld [vmem:[%s1915_s0 + $0x60] sm:$0xff]  ;;  %v47_v8 = vld [vmem:[%s1915_s0 + $0x68] sm:$0xff] }
   0x3   :  { %v48_v4 = vld [vmem:[%s1915_s0 + $0x70] sm:$0xff]  ;;  %162 = vperm.xlu0 %1322, %v88_v0   ;;  %142 = vperm.xlu2 %1324, %v84_v2   ;;  %v56_v10 = vpack.c.bf16 %v47_v8, %v46_v7  ;;  %v87_v11 = vld [vmem:[%s1917_s2 + $0x68] sm:$0xff]  ;;  %v89_v12 = vld [vmem:[%s1917_s2 + $0x78] sm:$0xff] }
   0x4   :  { %v57_v6 = vpack.c.bf16 %v49_v5, %v48_v4  ;;  %v85_v13 = vld [vmem:[%s1917_s2 + $0x58] sm:$0xff] }
   0x6   :  { %v257_v9 = vsel %vm210_vm0, %v57_v6, 0 }
   0x7   :  { %259 = vmatpush.bf16.xpose.msra.mxu0 %v257_v9  ;;  %1303 = vmatpush.bf16.xpose.msra.mxu3 %v257_v9 }
   0x8   :  { %15 = vsyncpa [#allocation4], 0  ;;  %v254_v14 = vsel %vm210_vm0, %v56_v10, 0  ;;  %v44_v15 = vld [vmem:[%s1915_s0 + $0x50] sm:$0xff]  ;;  %v45_v16 = vld [vmem:[%s1915_s0 + $0x58] sm:$0xff]  ;;  %s1449_s26 = smov [#allocation3]  }
   0x9   :  { %v55_v17 = vpack.c.bf16 %v45_v16, %v44_v15  ;;  %v83_v18 = vld [vmem:[%s1917_s2 + $0x48] sm:$0xff]  ;;  %v82_v19 = vld [vmem:[%s1917_s2 + $0x40] sm:$0xff]  ;;  %v80_v20 = vld [vmem:[%s1917_s2 + $0x30] sm:$0xff]  ;;  %s1166_s28 = sshll.u32 %s1924_s9, 4  ;;  %s1167_s28 = int_to_ptr.hbm [resolvable:$true] %s1166_s28 }
   0xa   :  { %157 = vperm.xlu1 %1323, %v87_v11   ;;  %v42_v22 = vld [vmem:[%s1915_s0 + $0x40] sm:$0xff]  ;;  %v43_v23 = vld [vmem:[%s1915_s0 + $0x48] sm:$0xff]  ;;  %v81_v26 = vld [vmem:[%s1917_s2 + $0x38] sm:$0xff] }
   0xb   :  { %167 = vperm.xlu0 %1322, %v89_v12   ;;  %147 = vperm.xlu2 %1324, %v85_v13   ;;  %v251_v21 = vsel %vm210_vm0, %v55_v17, 0  ;;  %v54_v24 = vpack.c.bf16 %v43_v23, %v42_v22  ;;  %v78_v25 = vld [vmem:[%s1917_s2 + $0x20] sm:$0xff]  ;;  %v79_v27 = vld [vmem:[%s1917_s2 + $0x28] sm:$0xff]  ;;  %v40_v29 = vld [vmem:[%s1915_s0 + $0x30] sm:$0xff] }
   0xc   :  { %v41_v30 = vld [vmem:[%s1915_s0 + $0x38] sm:$0xff]  ;;  %v76_v33 = vld [vmem:[%s1917_s2 + $0x10] sm:$0xff]  ;;  %v74_v34 = vld [vmem:[%s1917_s2] sm:$0xff] }
   0xd   :  { %v248_v28 = vsel %vm210_vm0, %v54_v24, 0  ;;  %v53_v31 = vpack.c.bf16 %v41_v30, %v40_v29  ;;  %v77_v32 = vld [vmem:[%s1917_s2 + $0x18] sm:$0xff]  ;;  %v38_v36 = vld [vmem:[%s1915_s0 + $0x20] sm:$0xff]  ;;  %v39_v37 = vld [vmem:[%s1915_s0 + $0x28] sm:$0xff] }
   0xe   :  { %v52_v38 = vpack.c.bf16 %v39_v37, %v38_v36  ;;  %v386_v39 = vld [vmem:[%s1919_s4 + $0x70] sm:$0xff]  ;;  %v75_v40 = vld [vmem:[%s1917_s2 + $0x8] sm:$0xff]  ;;  %v387_v41 = vld [vmem:[%s1919_s4 + $0x78] sm:$0xff] }
   0xf   :  { %260 = vmatpush.bf16.xpose.msra.mxu0 %v254_v14  ;;  %1304 = vmatpush.bf16.xpose.msra.mxu3 %v254_v14  ;;  %v245_v35 = vsel %vm210_vm0, %v53_v31, 0  ;;  %v36_v43 = vld [vmem:[%s1915_s0 + $0x10] sm:$0xff]  ;;  %v37_v44 = vld [vmem:[%s1915_s0 + $0x18] sm:$0xff]  ;;  %v385_v46 = vld [vmem:[%s1919_s4 + $0x68] sm:$0xff] }
  0x10   :  { %v242_v42 = vsel %vm210_vm0, %v52_v38, 0  ;;  %v51_v45 = vpack.c.bf16 %v37_v44, %v36_v43  ;;  %v384_v47 = vld [vmem:[%s1919_s4 + $0x60] sm:$0xff]  ;;  %v382_v48 = vld [vmem:[%s1919_s4 + $0x50] sm:$0xff]  ;;  %v35_v51 = vld [vmem:[%s1915_s0 + $0x8] sm:$0xff] }
  0x11   :  { %v34_v50 = vld [vmem:[%s1915_s0] sm:$0xff]  ;;  %v383_v54 = vld [vmem:[%s1919_s4 + $0x58] sm:$0xff]  ;;  %v381_v55 = vld [vmem:[%s1919_s4 + $0x48] sm:$0xff] }
  0x12   :  { %137 = vperm.xlu1 %1323, %v83_v18   ;;  %v239_v49 = vsel %vm210_vm0, %v51_v45, 0  ;;  %v50_v52 = vpack.c.bf16 %v35_v51, %v34_v50  ;;  %v380_v53 = vld [vmem:[%s1919_s4 + $0x40] sm:$0xff]  ;;  %v379_v57 = vld [vmem:[%s1919_s4 + $0x38] sm:$0xff]  ;;  %v378_v58 = vld [vmem:[%s1919_s4 + $0x30] sm:$0xff] }
  0x13   :  { %132 = vperm.xlu0 %1322, %v82_v19   ;;  %122 = vperm.xlu2 %1324, %v80_v20   ;;  %v376_v59 = vld [vmem:[%s1919_s4 + $0x20] sm:$0xff]  ;;  %v1284_v61 = vld [vmem:[%s1916_s1 + $0x28] sm:$0xff]  ;;  %v374_v62 = vld [vmem:[%s1919_s4 + $0x10] sm:$0xff] }
  0x14   :  { %v236_v56 = vsel %vm210_vm0, %v50_v52, 0  ;;  %v1279_v60 = vld [vmem:[%s1916_s1] sm:$0xff]  ;;  %v377_v63 = vld [vmem:[%s1919_s4 + $0x28] sm:$0xff]  ;;  %v375_v0 = vld [vmem:[%s1919_s4 + $0x18] sm:$0xff] }
  0x15   :  { %v373_v1 = vld [vmem:[%s1919_s4 + $0x8] sm:$0xff]  ;;  %v372_v2 = vld [vmem:[%s1919_s4] sm:$0xff]  ;;  %v1285_v5 = vld [vmem:[%s1916_s1 + $0x30] sm:$0xff]  ;;  %s1164_s4 = sshll.u32 %s1449_s26, 4  ;;  %s1165_s4 = int_to_ptr.vmem [resolvable:$true] %s1164_s4 }
  0x16   :  { %v629_v3 = vld [vmem:[%s1921_s6] sm:$0xff]  ;;  %v1280_v4 = vld [vmem:[%s1916_s1 + $0x8] sm:$0xff]  ;;  %v631_v6 = vld [vmem:[%s1921_s6 + $0x10] sm:$0xff] }
  0x17   :  { %261 = vmatpush.bf16.xpose.msra.mxu0 %v251_v21  ;;  %1305 = vmatpush.bf16.xpose.msra.mxu3 %v251_v21  ;;  %v630_v7 = vld [vmem:[%s1921_s6 + $0x8] sm:$0xff]  ;;  %v632_v8 = vld [vmem:[%s1921_s6 + $0x18] sm:$0xff]  ;;  %v633_v10 = vld [vmem:[%s1921_s6 + $0x20] sm:$0xff] }
  0x18   :  { %v634_v9 = vld [vmem:[%s1921_s6 + $0x28] sm:$0xff]  ;;  %v635_v11 = vld [vmem:[%s1921_s6 + $0x30] sm:$0xff]  ;;  %v1286_v13 = vld [vmem:[%s1916_s1 + $0x38] sm:$0xff] }
  0x19   :  { %v1281_v12 = vld [vmem:[%s1916_s1 + $0x10] sm:$0xff]  ;;  %v637_v14 = vld [vmem:[%s1921_s6 + $0x40] sm:$0xff]  ;;  %v636_v15 = vld [vmem:[%s1921_s6 + $0x38] sm:$0xff] }
  0x1a   :  { %112 = vperm.xlu1 %1323, %v78_v25   ;;  %v638_v16 = vld [vmem:[%s1921_s6 + $0x48] sm:$0xff]  ;;  %v640_v17 = vld [vmem:[%s1921_s6 + $0x58] sm:$0xff]  ;;  %v639_v18 = vld [vmem:[%s1921_s6 + $0x50] sm:$0xff] }
  0x1b   :  { %127 = vperm.xlu0 %1322, %v81_v26   ;;  %117 = vperm.xlu2 %1324, %v79_v27   ;;  %v641_v19 = vld [vmem:[%s1921_s6 + $0x60] sm:$0xff]  ;;  %v1282_v20 = vld [vmem:[%s1916_s1 + $0x18] sm:$0xff]  ;;  %v643_v21 = vld [vmem:[%s1921_s6 + $0x70] sm:$0xff] }
  0x1c   :  { %v642_v22 = vld [vmem:[%s1921_s6 + $0x68] sm:$0xff]  ;;  %v644_v23 = vld [vmem:[%s1921_s6 + $0x78] sm:$0xff]  ;;  %v886_v25 = vld [vmem:[%s1922_s7] sm:$0xff] }
  0x1d   :  { %v887_v24 = vld [vmem:[%s1922_s7 + $0x8] sm:$0xff]  ;;  %v888_v26 = vld [vmem:[%s1922_s7 + $0x10] sm:$0xff]  ;;  %v1283_v30 = vld [vmem:[%s1916_s1 + $0x20] sm:$0xff] }
  0x1e   :  { %v903_v27 = vpack.c.bf16 %v887_v24, %v887_v24  ;;  %v904_v29 = vpack.c.bf16 %v888_v26, %v888_v26  ;;  %v890_v31 = vld [vmem:[%s1922_s7 + $0x20] sm:$0xff]  ;;  %v893_v37 = vld [vmem:[%s1922_s7 + $0x38] sm:$0xff]  ;;  %v892_v38 = vld [vmem:[%s1922_s7 + $0x30] sm:$0xff] }
  0x1f   :  { %262 = vmatpush.bf16.xpose.msra.mxu0 %v248_v28  ;;  %1306 = vmatpush.bf16.xpose.msra.mxu3 %v248_v28  ;;  %v902_v28 = vpack.c.bf16 %v886_v25, %v886_v25  ;;  %v896_v43 = vld [vmem:[%s1922_s7 + $0x50] sm:$0xff]  ;;  %v895_v44 = vld [vmem:[%s1922_s7 + $0x48] sm:$0xff]  ;;  %v897_v45 = vld [vmem:[%s1922_s7 + $0x58] sm:$0xff] }
  0x20   :  { %v899_v50 = vld [vmem:[%s1922_s7 + $0x68] sm:$0xff]  ;;  %v898_v51 = vld [vmem:[%s1922_s7 + $0x60] sm:$0xff]  ;;  %v900_v52 = vld [vmem:[%s1922_s7 + $0x70] sm:$0xff] }
  0x22   :  { %107 = vperm.xlu1 %1323, %v77_v32   ;;  %v889_v32 = vld [vmem:[%s1922_s7 + $0x18] sm:$0xff] }
  0x23   :  { %102 = vperm.xlu0 %1322, %v76_v33   ;;  %92 = vperm.xlu2 %1324, %v74_v34   ;;  %v891_v33 = vld [vmem:[%s1922_s7 + $0x28] sm:$0xff]  ;;  %v906_v34 = vpack.c.bf16 %v890_v31, %v890_v31 }
  0x24   :  { %v907_v36 = vpack.c.bf16 %v891_v33, %v891_v33 }
  0x27   :  { %263 = vmatpush.bf16.xpose.msra.mxu0 %v245_v35  ;;  %1307 = vmatpush.bf16.xpose.msra.mxu3 %v245_v35  ;;  %v905_v35 = vpack.c.bf16 %v889_v32, %v889_v32 }
  0x2a   :  { %460 = vperm.xlu1 %1323, %v386_v39   ;;  %v894_v39 = vld [vmem:[%s1922_s7 + $0x40] sm:$0xff] }
  0x2b   :  { %97 = vperm.xlu0 %1322, %v75_v40   ;;  %465 = vperm.xlu2 %1324, %v387_v41   ;;  %v909_v40 = vpack.c.bf16 %v893_v37, %v893_v37  ;;  %v908_v41 = vpack.c.bf16 %v892_v38, %v892_v38 }
  0x2f   :  { %264 = vmatpush.bf16.xpose.msra.mxu0 %v242_v42  ;;  %1308 = vmatpush.bf16.xpose.msra.mxu3 %v242_v42  ;;  %v910_v42 = vpack.c.bf16 %v894_v39, %v894_v39 }
  0x32   :  { %455 = vperm.xlu1 %1323, %v385_v46   ;;  %v912_v46 = vpack.c.bf16 %v896_v43, %v896_v43 }
  0x33   :  { %450 = vperm.xlu0 %1322, %v384_v47   ;;  %440 = vperm.xlu2 %1324, %v382_v48   ;;  %v911_v48 = vpack.c.bf16 %v895_v44, %v895_v44 }
  0x37   :  { %265 = vmatpush.bf16.xpose.msra.mxu0 %v239_v49  ;;  %1309 = vmatpush.bf16.xpose.msra.mxu3 %v239_v49  ;;  %v913_v49 = vpack.c.bf16 %v897_v45, %v897_v45 }
  0x3a   :  { %430 = vperm.xlu1 %1323, %v380_v53   ;;  %v915_v53 = vpack.c.bf16 %v899_v50, %v899_v50 }
  0x3b   :  { %445 = vperm.xlu0 %1322, %v383_v54   ;;  %435 = vperm.xlu2 %1324, %v381_v55   ;;  %v914_v54 = vpack.c.bf16 %v898_v51, %v898_v51  ;;  %v916_v55 = vpack.c.bf16 %v900_v52, %v900_v52 }
  0x3f   :  { %266 = vmatpush.bf16.xpose.msra.mxu0 %v236_v56  ;;  %1310 = vmatpush.bf16.xpose.msra.mxu3 %v236_v56 }
  0x42   :  { %425 = vperm.xlu1 %1323, %v379_v57  }
  0x43   :  { %420 = vperm.xlu0 %1322, %v378_v58   ;;  %410 = vperm.xlu2 %1324, %v376_v59   ;;  %v901_v58 = vld [vmem:[%s1922_s7 + $0x78] sm:$0xff] }
  0x44   :  { %v917_v59 = vpack.c.bf16 %v901_v58, %v901_v58 }
  0x46   :  { %1207 = vmatmul.msk.bf16.vlgmr.msra.gmra.mxu0 %vm210_vm0, %v1279_v60  ;;  %1212 = vmatmul.msk.bf16.vlgmr.msra.gmra.mxu3 %vm210_vm0, %v1284_v61 }
  0x4a   :  { %400 = vperm.xlu1 %1323, %v374_v62  }
  0x4b   :  { %415 = vperm.xlu0 %1322, %v377_v63   ;;  %405 = vperm.xlu2 %1324, %v375_v0  }
  0x52   :  { %395 = vperm.xlu1 %1323, %v373_v1  }
  0x53   :  { %390 = vperm.xlu0 %1322, %v372_v2   ;;  %647 = vperm.xlu2 %1324, %v629_v3  }
  0x56   :  { %1208 = vmatmul.msk.bf16.gmra.mxu0 %vm210_vm0, %v1280_v4  ;;  %1213 = vmatmul.msk.bf16.gmra.mxu3 %vm210_vm0, %v1285_v5 }
  0x5a   :  { %657 = vperm.xlu1 %1323, %v631_v6  }
  0x5b   :  { %652 = vperm.xlu0 %1322, %v630_v7   ;;  %662 = vperm.xlu2 %1324, %v632_v8  }
  0x5d   :  { %v143_v56 = vpop.permute.xlu2 %142 }
  0x62   :  { %672 = vperm.xlu1 %1323, %v634_v9  }
  0x63   :  { %667 = vperm.xlu0 %1322, %v633_v10   ;;  %677 = vperm.xlu2 %1324, %v635_v11  }
  0x65   :  { %v148_v60 = vpop.permute.xlu2 %147 }
  0x66   :  { %1209 = vmatmul.msk.bf16.gmra.mxu0 %vm210_vm0, %v1281_v12  ;;  %1214 = vmatmul.msk.bf16.gmra.mxu3 %vm210_vm0, %v1286_v13 }
  0x6a   :  { %687 = vperm.xlu1 %1323, %v637_v14  }
  0x6b   :  { %682 = vperm.xlu0 %1322, %v636_v15   ;;  %692 = vperm.xlu2 %1324, %v638_v16  }
  0x6d   :  { %v1782_v62 = vpop.permute.xlu2 %122 }
  0x72   :  { %702 = vperm.xlu1 %1323, %v640_v17  }
  0x73   :  { %697 = vperm.xlu0 %1322, %v639_v18   ;;  %707 = vperm.xlu2 %1324, %v641_v19  }
  0x74   :  { %v153_v16 = vpop.permute.xlu1 %152 }
  0x75   :  { %v163_v47 = vpop.permute.xlu0 %162  ;;  %v1784_v0 = vpop.permute.xlu2 %117 }
  0x76   :  { %1210 = vmatmul.msk.bf16.gmra.mxu0 %vm210_vm0, %v1282_v20 }
  0x7a   :  { %717 = vperm.xlu1 %1323, %v643_v21  }
  0x7b   :  { %712 = vperm.xlu0 %1322, %v642_v22   ;;  %722 = vperm.xlu2 %1324, %v644_v23  }
  0x7c   :  { %v158_v19 = vpop.permute.xlu1 %157 }
  0x7d   :  { %v168_v57 = vpop.permute.xlu0 %167  ;;  %v93_v4 = vpop.permute.xlu2 %92 }
  0x82   :  { %929 = vperm.xlu1 %1323, %v903_v27  }
  0x83   :  { %920 = vperm.xlu0 %1322, %v902_v28   ;;  %938 = vperm.xlu2 %1324, %v904_v29  }
  0x85   :  { %v1780_v61 = vpop.permute.xlu0 %132 }
  0x86   :  { %1211 = vmatmul.msk.bf16.gmra.mxu0 %vm210_vm0, %v1283_v30 }
  0x8a   :  { %956 = vperm.xlu1 %1323, %v906_v34  }
  0x8b   :  { %947 = vperm.xlu0 %1322, %v905_v35   ;;  %965 = vperm.xlu2 %1324, %v907_v36   ;;  %v138_v35 = vpop.permute.xlu1 %137 }
  0x8d   :  { %v128_v63 = vpop.permute.xlu0 %127 }
  0x92   :  { %983 = vperm.xlu1 %1323, %v909_v40  }
  0x93   :  { %974 = vperm.xlu0 %1322, %v908_v41   ;;  %992 = vperm.xlu2 %1324, %v910_v42   ;;  %v113_v45 = vpop.permute.xlu1 %112 }
  0x95   :  { %v1786_v1 = vpop.permute.xlu0 %102 }
  0x9a   :  { %1010 = vperm.xlu1 %1323, %v912_v46  }
  0x9b   :  { %1001 = vperm.xlu0 %1322, %v911_v48   ;;  %1019 = vperm.xlu2 %1324, %v913_v49  }
  0x9d   :  { %v98_v5 = vpop.permute.xlu0 %97 }
  0xa2   :  { %1037 = vperm.xlu1 %1323, %v915_v53  }
  0xa3   :  { %1028 = vperm.xlu0 %1322, %v914_v54   ;;  %1046 = vperm.xlu2 %1324, %v916_v55  }
  0xab   :  { %1055 = vperm.xlu0 %1322, %v917_v59  }
  0xc3   :  { %v268_v2 = vpop.f32.mrf.mxu0 }
  0xc4   :  { %v269_v7 = vadd.f32 %v268_v2, %v93_v4 }
  0xc9   :  { %v293_v3 = vpop.f32.mrf.mxu3 }
  0xca   :  { %v294_v25 = vadd.f32 %v293_v3, %v143_v56 }
  0xcb   :  { %v270_v6 = vpop.f32.mrf.mxu0 }
  0xcc   :  { %v271_v8 = vadd.f32 %v270_v6, %v98_v5 }
  0xce   :  { %v1788_v9 = vpack.c.bf16 %v271_v8, %v269_v7 }
  0xd1   :  { %v295_v10 = vpop.f32.mrf.mxu3 }
  0xd2   :  { %v296_v26 = vadd.f32 %v295_v10, %v148_v60 }
  0xd3   :  { %v1790_v11 = vpop.f32.mrf.mxu0 }
  0xd4   :  { %v313_v32 = vpack.c.bf16 %v296_v26, %v294_v25  ;;  %v1294_v26 = vld [vmem:[%s1918_s3 + $0x38] sm:$0xff] }
  0xd6   :  { %v326_v36 = vunpack.c.l.bf16 %v313_v32  ;;  %v327_v38 = vunpack.c.h.bf16 %v313_v32 }
  0xd9   :  { %v298_v12 = vpop.f32.mrf.mxu3 }
  0xda   :  { %v299_v20 = vadd.f32 %v298_v12, %v153_v16  ;;  %v316_v16 = vunpack.c.l.bf16 %v1788_v9 }
  0xdb   :  { %v275_v13 = vpop.f32.mrf.mxu0 }
  0xe1   :  { %v300_v14 = vpop.f32.mrf.mxu3 }
  0xe2   :  { %v301_v21 = vadd.f32 %v300_v14, %v158_v19 }
  0xe3   :  { %v278_v15 = vpop.f32.mrf.mxu0 }
  0xe4   :  { %v314_v27 = vpack.c.bf16 %v301_v21, %v299_v20  ;;  %v279_v58 = vadd.f32 %v278_v15, %v113_v45 }
  0xe6   :  { %v328_v33 = vunpack.c.l.bf16 %v314_v27  ;;  %v329_v34 = vunpack.c.h.bf16 %v314_v27  ;;  %v1288_v27 = vld [vmem:[%s1918_s3 + $0x8] sm:$0xff] }
  0xe9   :  { %v303_v17 = vpop.f32.mrf.mxu3 }
  0xea   :  { %v304_v22 = vadd.f32 %v303_v17, %v163_v47 }
  0xeb   :  { %v280_v18 = vpop.f32.mrf.mxu0 }
  0xec   :  { %v281_v53 = vadd.f32 %v280_v18, %v1784_v0 }
  0xee   :  { %v310_v2 = vpack.c.bf16 %v281_v53, %v279_v58 }
  0xf0   :  { %v320_v0 = vunpack.c.l.bf16 %v310_v2  ;;  %v321_v7 = vunpack.c.h.bf16 %v310_v2 }
  0xf1   :  { %v305_v23 = vpop.f32.mrf.mxu3 }
  0xf2   :  { %v306_v24 = vadd.f32 %v305_v23, %v168_v57  ;;  %v108_v57 = vpop.permute.xlu1 %107 }
  0xf3   :  { %v283_v28 = vpop.f32.mrf.mxu0  ;;  %v276_v60 = vadd.f32 %v275_v13, %v108_v57 }
  0xf4   :  { %v315_v29 = vpack.c.bf16 %v306_v24, %v304_v22  ;;  %v284_v51 = vadd.f32 %v283_v28, %v1782_v62  ;;  %v274_v62 = vadd.f32 %v1790_v11, %v1786_v1  ;;  %v317_v1 = vunpack.c.h.bf16 %v1788_v9  ;;  %v1287_v9 = vld [vmem:[%s1918_s3] sm:$0xff]  ;;  %v1289_v28 = vld [vmem:[%s1918_s3 + $0x10] sm:$0xff] }
  0xf6   :  { %v330_v30 = vunpack.c.l.bf16 %v315_v29  ;;  %v331_v31 = vunpack.c.h.bf16 %v315_v29  ;;  %v309_v6 = vpack.c.bf16 %v276_v60, %v274_v62  ;;  %v1290_v29 = vld [vmem:[%s1918_s3 + $0x18] sm:$0xff] }
  0xf8   :  { %1325 = vtanh.f32 %v330_v30  ;;  %v318_v8 = vunpack.c.l.bf16 %v309_v6  ;;  %v319_v12 = vunpack.c.h.bf16 %v309_v6  ;;  %v1291_v30 = vld [vmem:[%s1918_s3 + $0x20] sm:$0xff] }
  0xf9   :  { %1327 = vtanh.f32 %v331_v31  ;;  %v1292_v31 = vld [vmem:[%s1918_s3 + $0x28] sm:$0xff] }
  0xfa   :  { %1329 = vtanh.f32 %v328_v33  ;;  %v461_v32 = vpop.permute.xlu1 %460 }
  0xfb   :  { %v285_v37 = vpop.f32.mrf.mxu0  ;;  %1331 = vtanh.f32 %v329_v34  ;;  %v1293_v34 = vld [vmem:[%s1918_s3 + $0x30] sm:$0xff] }
  0xfc   :  { %1333 = vtanh.f32 %v326_v36  ;;  %v286_v49 = vadd.f32 %v285_v37, %v128_v63 }
  0xfd   :  { %1335 = vtanh.f32 %v327_v38  ;;  %v466_v38 = vpop.permute.xlu2 %465 }
  0xfe   :  { %v1326_v39 = vpop.eup %1325  ;;  %v311_v54 = vpack.c.bf16 %v286_v49, %v284_v51 }
  0xff   :  { %v1328_v40 = vpop.eup %1327 }
 0x100   :  { %v1330_v41 = vpop.eup %1329  ;;  %v355_v42 = vpack.c.bf16 %v1328_v40, %v1326_v39  ;;  %v322_v3 = vunpack.c.l.bf16 %v311_v54  ;;  %v323_v5 = vunpack.c.h.bf16 %v311_v54 }
 0x101   :  { %v1332_v43 = vpop.eup %1331 }
 0x102   :  { %516 = vmatpush.bf16.msra.mxu1 %v355_v42  ;;  %1311 = vmatpush.bf16.msrb.mxu3 %v355_v42  ;;  %v1334_v46 = vpop.eup %1333  ;;  %v354_v47 = vpack.c.bf16 %v1332_v43, %v1330_v41  ;;  %v456_v33 = vpop.permute.xlu1 %455 }
 0x103   :  { %v288_v44 = vpop.f32.mrf.mxu0  ;;  %v1336_v48 = vpop.eup %1335 }
 0x104   :  { %v353_v50 = vpack.c.bf16 %v1336_v48, %v1334_v46  ;;  %v289_v55 = vadd.f32 %v288_v44, %v1780_v61 }
 0x105   :  { %v441_v41 = vpop.permute.xlu2 %440 }
 0x106   :  { %517 = vmatpush.bf16.msra.mxu1 %v354_v47  ;;  %1312 = vmatpush.bf16.msrb.mxu3 %v354_v47 }
 0x10a   :  { %518 = vmatpush.bf16.msra.mxu1 %v353_v50  ;;  %1313 = vmatpush.bf16.msrb.mxu3 %v353_v50  ;;  %v431_v36 = vpop.permute.xlu1 %430 }
 0x10b   :  { %v290_v52 = vpop.f32.mrf.mxu0 }
 0x10c   :  { %v291_v56 = vadd.f32 %v290_v52, %v138_v35  ;;  %v451_v35 = vpop.permute.xlu0 %450 }
 0x10d   :  { %v436_v45 = vpop.permute.xlu2 %435 }
 0x10e   :  { %v312_v59 = vpack.c.bf16 %v291_v56, %v289_v55 }
 0x110   :  { %v324_v4 = vunpack.c.l.bf16 %v312_v59  ;;  %v325_v63 = vunpack.c.h.bf16 %v312_v59 }
 0x112   :  { %1337 = vtanh.f32 %v324_v4  ;;  %v426_v39 = vpop.permute.xlu1 %425 }
 0x113   :  { %1339 = vtanh.f32 %v325_v63 }
 0x114   :  { %1341 = vtanh.f32 %v322_v3  ;;  %v446_v37 = vpop.permute.xlu0 %445 }
 0x115   :  { %1343 = vtanh.f32 %v323_v5  ;;  %v411_v53 = vpop.permute.xlu2 %410 }
 0x116   :  { %1345 = vtanh.f32 %v320_v0 }
 0x117   :  { %1347 = vtanh.f32 %v321_v7 }
 0x118   :  { %v1338_v61 = vpop.eup %1337  ;;  %1349 = vtanh.f32 %v318_v8 }
 0x119   :  { %v1340_v10 = vpop.eup %1339  ;;  %1351 = vtanh.f32 %v319_v12 }
 0x11a   :  { %v1342_v13 = vpop.eup %1341  ;;  %v352_v14 = vpack.c.bf16 %v1340_v10, %v1338_v61  ;;  %1353 = vtanh.f32 %v316_v16  ;;  %v401_v42 = vpop.permute.xlu1 %400 }
 0x11b   :  { %v1344_v15 = vpop.eup %1343  ;;  %1355 = vtanh.f32 %v317_v1 }
 0x11c   :  { %519 = vmatpush.bf16.msra.mxu1 %v352_v14  ;;  %1314 = vmatpush.bf16.msrb.mxu3 %v352_v14  ;;  %v1346_v11 = vpop.eup %1345  ;;  %v351_v17 = vpack.c.bf16 %v1344_v15, %v1342_v13  ;;  %v421_v40 = vpop.permute.xlu0 %420 }
 0x11d   :  { %v1348_v18 = vpop.eup %1347  ;;  %v406_v2 = vpop.permute.xlu2 %405 }
 0x11e   :  { %v1350_v19 = vpop.eup %1349  ;;  %v350_v20 = vpack.c.bf16 %v1348_v18, %v1346_v11 }
 0x11f   :  { %v1352_v21 = vpop.eup %1351 }
 0x120   :  { %520 = vmatpush.bf16.msra.mxu1 %v351_v17  ;;  %1315 = vmatpush.bf16.msrb.mxu3 %v351_v17  ;;  %v1354_v22 = vpop.eup %1353  ;;  %v349_v23 = vpack.c.bf16 %v1352_v21, %v1350_v19 }
 0x121   :  { %v1356_v24 = vpop.eup %1355 }
 0x122   :  { %v348_v25 = vpack.c.bf16 %v1356_v24, %v1354_v22  ;;  %v396_v47 = vpop.permute.xlu1 %395 }
 0x124   :  { %521 = vmatpush.bf16.msra.mxu1 %v350_v20  ;;  %1316 = vmatpush.bf16.msrb.mxu3 %v350_v20  ;;  %v416_v43 = vpop.permute.xlu0 %415 }
 0x128   :  { %522 = vmatpush.bf16.msra.mxu1 %v349_v23  ;;  %1317 = vmatpush.bf16.msrb.mxu3 %v349_v23 }
 0x12c   :  { %523 = vmatpush.bf16.msra.mxu1 %v348_v25  ;;  %1318 = vmatpush.bf16.msrb.mxu3 %v348_v25  ;;  %v391_v48 = vpop.permute.xlu0 %390 }
 0x12f   :  { %524 = vmatmul.bf16.vlgmr.msra.gmra.mxu1 %v1287_v9  ;;  %559 = vmatmul.bf16.vlgmr.msrb.gmra.mxu3 %v1294_v26 }
 0x13f   :  { %529 = vmatmul.bf16.gmra.mxu1 %v1288_v27 }
 0x14f   :  { %534 = vmatmul.bf16.gmra.mxu1 %v1289_v28 }
 0x15f   :  { %539 = vmatmul.bf16.gmra.mxu1 %v1290_v29 }
 0x16f   :  { %544 = vmatmul.bf16.gmra.mxu1 %v1291_v30 }
 0x17f   :  { %549 = vmatmul.bf16.gmra.mxu1 %v1292_v31 }
 0x18f   :  { %554 = vmatmul.bf16.gmra.mxu1 %v1293_v34 }
 0x1ac   :  { %v525_v44 = vpop.f32.mrf.mxu1 }
 0x1ad   :  { %v526_v50 = vadd.f32 %v525_v44, %v391_v48 }
 0x1b2   :  { %v560_v46 = vpop.f32.mrf.mxu3 }
 0x1b3   :  { %v561_v55 = vadd.f32 %v560_v46, %v461_v32 }
 0x1b4   :  { %v527_v49 = vpop.f32.mrf.mxu1 }
 0x1b5   :  { %v528_v51 = vadd.f32 %v527_v49, %v396_v47 }
 0x1b7   :  { %v1823_v52 = vpack.c.bf16 %v528_v51, %v526_v50 }
 0x1ba   :  { %v562_v54 = vpop.f32.mrf.mxu3 }
 0x1bb   :  { %v563_v56 = vadd.f32 %v562_v54, %v466_v38  ;;  %v573_v54 = vunpack.c.l.bf16 %v1823_v52 }
 0x1bc   :  { %v530_v57 = vpop.f32.mrf.mxu1 }
 0x1bd   :  { %v572_v58 = vpack.c.bf16 %v563_v56, %v561_v55  ;;  %v531_v4 = vadd.f32 %v530_v57, %v401_v42  ;;  %v574_v55 = vunpack.c.h.bf16 %v1823_v52  ;;  %v1295_v52 = vld [vmem:[%s1920_s5] sm:$0xff] }
 0x1bf   :  { %v587_v59 = vunpack.c.l.bf16 %v572_v58  ;;  %v588_v60 = vunpack.c.h.bf16 %v572_v58 }
 0x1c1   :  { %1357 = vtanh.f32 %v587_v59 }
 0x1c2   :  { %1359 = vtanh.f32 %v588_v60 }
 0x1c4   :  { %v532_v3 = vpop.f32.mrf.mxu1 }
 0x1c5   :  { %v533_v63 = vadd.f32 %v532_v3, %v406_v2 }
 0x1c7   :  { %v1358_v5 = vpop.eup %1357  ;;  %v1825_v62 = vpack.c.bf16 %v533_v63, %v531_v4 }
 0x1c8   :  { %v1360_v6 = vpop.eup %1359 }
 0x1c9   :  { %v612_v0 = vpack.c.bf16 %v1360_v6, %v1358_v5  ;;  %v575_v48 = vunpack.c.l.bf16 %v1825_v62  ;;  %v576_v49 = vunpack.c.h.bf16 %v1825_v62  ;;  %v1296_v62 = vld [vmem:[%s1920_s5 + $0x8] sm:$0xff]  ;;  %v1297_v6 = vld [vmem:[%s1920_s5 + $0x10] sm:$0xff] }
 0x1cb   :  { %773 = vmatpush.bf16.msra.mxu2 %v612_v0  ;;  %v1298_v0 = vld [vmem:[%s1920_s5 + $0x18] sm:$0xff] }
 0x1cc   :  { %v535_v7 = vpop.f32.mrf.mxu1 }
 0x1cd   :  { %v536_v8 = vadd.f32 %v535_v7, %v411_v53  ;;  %v1299_v7 = vld [vmem:[%s1920_s5 + $0x20] sm:$0xff] }
 0x1d4   :  { %v537_v61 = vpop.f32.mrf.mxu1 }
 0x1d5   :  { %v538_v10 = vadd.f32 %v537_v61, %v416_v43  ;;  %v1300_v61 = vld [vmem:[%s1920_s5 + $0x28] sm:$0xff] }
 0x1d7   :  { %v567_v12 = vpack.c.bf16 %v538_v10, %v536_v8  ;;  %v1301_v8 = vld [vmem:[%s1920_s5 + $0x30] sm:$0xff]  ;;  %v658_v10 = vpop.permute.xlu1 %657 }
 0x1d9   :  { %v577_v44 = vunpack.c.l.bf16 %v567_v12 }
 0x1dc   :  { %v540_v13 = vpop.f32.mrf.mxu1 }
 0x1dd   :  { %v541_v32 = vadd.f32 %v540_v13, %v421_v40  ;;  %v578_v40 = vunpack.c.h.bf16 %v567_v12  ;;  %v653_v12 = vpop.permute.xlu0 %652  ;;  %v648_v13 = vpop.permute.xlu2 %647 }
 0x1e4   :  { %v542_v14 = vpop.f32.mrf.mxu1 }
 0x1e5   :  { %v543_v26 = vadd.f32 %v542_v14, %v426_v39  ;;  %v1852_v14 = vpop.permute.xlu1 %672 }
 0x1e7   :  { %v568_v34 = vpack.c.bf16 %v543_v26, %v541_v32 }
 0x1e9   :  { %v579_v42 = vunpack.c.l.bf16 %v568_v34 }
 0x1ec   :  { %v545_v15 = vpop.f32.mrf.mxu1 }
 0x1ed   :  { %v546_v25 = vadd.f32 %v545_v15, %v431_v36  ;;  %v668_v15 = vpop.permute.xlu0 %667 }
 0x1f4   :  { %v547_v16 = vpop.f32.mrf.mxu1 }
 0x1f5   :  { %v548_v21 = vadd.f32 %v547_v16, %v436_v45  ;;  %v1302_v16 = vld [vmem:[%s1920_s5 + $0x38] sm:$0xff] }
 0x1f7   :  { %v569_v27 = vpack.c.bf16 %v548_v21, %v546_v25 }
 0x1f9   :  { %v581_v38 = vunpack.c.l.bf16 %v569_v27 }
 0x1fc   :  { %v550_v1 = vpop.f32.mrf.mxu1 }
 0x1fd   :  { %v551_v19 = vadd.f32 %v550_v1, %v441_v41  ;;  %v663_v1 = vpop.permute.xlu2 %662 }
 0x204   :  { %v552_v11 = vpop.f32.mrf.mxu1 }
 0x205   :  { %v553_v18 = vadd.f32 %v552_v11, %v446_v37  ;;  %v582_v37 = vunpack.c.h.bf16 %v569_v27  ;;  %v1857_v11 = vpop.permute.xlu1 %687 }
 0x207   :  { %v570_v22 = vpack.c.bf16 %v553_v18, %v551_v19  ;;  %v1861_v18 = vpop.permute.xlu2 %677 }
 0x209   :  { %v583_v28 = vunpack.c.l.bf16 %v570_v22  ;;  %v584_v31 = vunpack.c.h.bf16 %v570_v22 }
 0x20c   :  { %v555_v17 = vpop.f32.mrf.mxu1 }
 0x20d   :  { %v556_v23 = vadd.f32 %v555_v17, %v451_v35  ;;  %v580_v35 = vunpack.c.h.bf16 %v568_v34  ;;  %v1859_v17 = vpop.permute.xlu0 %682  ;;  %v1863_v19 = vpop.permute.xlu1 %702 }
 0x214   :  { %v557_v20 = vpop.f32.mrf.mxu1 }
 0x215   :  { %v558_v24 = vadd.f32 %v557_v20, %v456_v33  ;;  %v1865_v20 = vpop.permute.xlu0 %697 }
 0x217   :  { %v571_v9 = vpack.c.bf16 %v558_v24, %v556_v23  ;;  %v1867_v24 = vpop.permute.xlu2 %692 }
 0x219   :  { %v585_v29 = vunpack.c.l.bf16 %v571_v9  ;;  %v586_v30 = vunpack.c.h.bf16 %v571_v9  ;;  %v1869_v9 = vpop.permute.xlu1 %717 }
 0x21b   :  { %1361 = vtanh.f32 %v585_v29 }
 0x21c   :  { %1363 = vtanh.f32 %v586_v30  ;;  %v1448_v30 = vmov 839922192  }
 0x21d   :  { %1365 = vtanh.f32 %v583_v28  ;;  %v1871_v26 = vpop.permute.xlu0 %712 }
 0x21e   :  { %1367 = vtanh.f32 %v584_v31  ;;  %v924_v31 = vunpack.c.l.s4 %v1448_v30 }
 0x21f   :  { %1369 = vtanh.f32 %v581_v38  ;;  %v1873_v38 = vpop.permute.xlu2 %707 }
 0x220   :  { %1371 = vtanh.f32 %v582_v37  ;;  %v1875_v37 = vunpack.c.0.s8 %v924_v31 }
 0x221   :  { %v1362_v41 = vpop.eup %1361  ;;  %1373 = vtanh.f32 %v579_v42  ;;  %v930_v42 = vpop.permute.xlu1 %929 }
 0x222   :  { %v1364_v33 = vpop.eup %1363  ;;  %1375 = vtanh.f32 %v580_v35 }
 0x223   :  { %v1366_v36 = vpop.eup %1365  ;;  %v611_v39 = vpack.c.bf16 %v1364_v33, %v1362_v41  ;;  %1377 = vtanh.f32 %v577_v44 }
 0x224   :  { %v1368_v43 = vpop.eup %1367  ;;  %1379 = vtanh.f32 %v578_v40 }
 0x225   :  { %774 = vmatpush.bf16.msra.mxu2 %v611_v39  ;;  %v1370_v45 = vpop.eup %1369  ;;  %v610_v46 = vpack.c.bf16 %v1368_v43, %v1366_v36  ;;  %1381 = vtanh.f32 %v575_v48  ;;  %v921_v33 = vpop.permute.xlu0 %920  ;;  %v935_v43 = vperm.slane %v930_v42, %v1875_v37 }
 0x226   :  { %v1372_v47 = vpop.eup %1371  ;;  %1383 = vtanh.f32 %v576_v49  ;;  %v926_v44 = vperm.slane %v921_v33, %v1875_v37 }
 0x227   :  { %v1374_v50 = vpop.eup %1373  ;;  %v609_v51 = vpack.c.bf16 %v1372_v47, %v1370_v45  ;;  %1385 = vtanh.f32 %v573_v54  ;;  %v1079_v48 = vunpack.c.l.bf16 %v935_v43 }
 0x228   :  { %v1376_v53 = vpop.eup %1375  ;;  %1387 = vtanh.f32 %v574_v55  ;;  %v1078_v49 = vunpack.c.l.bf16 %v926_v44 }
 0x229   :  { %775 = vmatpush.bf16.msra.mxu2 %v610_v46  ;;  %v1378_v56 = vpop.eup %1377  ;;  %v608_v57 = vpack.c.bf16 %v1376_v53, %v1374_v50  ;;  %v1879_v53 = vpop.permute.xlu2 %722 }
 0x22a   :  { %v1380_v58 = vpop.eup %1379  ;;  %v957_v42 = vpop.permute.xlu1 %956 }
 0x22b   :  { %v1382_v59 = vpop.eup %1381  ;;  %v607_v60 = vpack.c.bf16 %v1380_v58, %v1378_v56 }
 0x22c   :  { %v1384_v2 = vpop.eup %1383 }
 0x22d   :  { %776 = vmatpush.bf16.msra.mxu2 %v609_v51  ;;  %v1386_v3 = vpop.eup %1385  ;;  %v606_v4 = vpack.c.bf16 %v1384_v2, %v1382_v59 }
 0x22e   :  { %v1388_v63 = vpop.eup %1387 }
 0x22f   :  { %v605_v5 = vpack.c.bf16 %v1388_v63, %v1386_v3  ;;  %v948_v3 = vpop.permute.xlu0 %947 }
 0x231   :  { %777 = vmatpush.bf16.msra.mxu2 %v608_v57 }
 0x235   :  { %778 = vmatpush.bf16.msra.mxu2 %v607_v60 }
 0x239   :  { %779 = vmatpush.bf16.msra.mxu2 %v606_v4 }
 0x23d   :  { %780 = vmatpush.bf16.msra.mxu2 %v605_v5  ;;  %v939_v5 = vpop.permute.xlu2 %938 }
 0x240   :  { %781 = vmatmul.bf16.vlgmr.msra.gmra.mxu2 %v1295_v52 }
 0x250   :  { %786 = vmatmul.bf16.gmra.mxu2 %v1296_v62  ;;  %v944_v62 = vperm.slane %v939_v5, %v1875_v37 }
 0x260   :  { %791 = vmatmul.bf16.gmra.mxu2 %v1297_v6  ;;  %v953_v6 = vperm.slane %v948_v3, %v1875_v37 }
 0x270   :  { %796 = vmatmul.bf16.gmra.mxu2 %v1298_v0 }
 0x280   :  { %801 = vmatmul.bf16.gmra.mxu2 %v1299_v7 }
 0x290   :  { %806 = vmatmul.bf16.gmra.mxu2 %v1300_v61 }
 0x2a0   :  { %811 = vmatmul.bf16.gmra.mxu2 %v1301_v8 }
 0x2b0   :  { %816 = vmatmul.bf16.gmra.mxu2 %v1302_v16 }
 0x2c3   :  { %v782_v21 = vpop.f32.mrf.mxu2 }
 0x2c4   :  { %v783_v22 = vadd.f32 %v782_v21, %v648_v13 }
 0x2c6   :  { %v822_v23 = vpack.c.bf16 %v783_v22, %v783_v22 }
 0x2c8   :  { %v838_v25 = vunpack.c.l.bf16 %v822_v23 }
 0x2ca   :  { %1389 = vtanh.f32 %v838_v25 }
 0x2cb   :  { %v784_v27 = vpop.f32.mrf.mxu2 }
 0x2cc   :  { %v785_v28 = vadd.f32 %v784_v27, %v653_v12  ;;  %v1081_v12 = vunpack.c.l.bf16 %v953_v6 }
 0x2ce   :  { %v823_v29 = vpack.c.bf16 %v785_v28, %v785_v28 }
 0x2d0   :  { %v839_v32 = vunpack.c.l.bf16 %v823_v29  ;;  %v1390_v34 = vpop.eup %1389 }
 0x2d1   :  { %v870_v36 = vpack.c.bf16 %v1390_v34, %v1390_v34 }
 0x2d2   :  { %1391 = vtanh.f32 %v839_v32 }
 0x2d3   :  { %v787_v41 = vpop.f32.mrf.mxu2  ;;  %v1062_v46 = vunpack.c.l.bf16 %v870_v36  ;;  %v966_v36 = vpop.permute.xlu2 %965 }
 0x2d4   :  { %v788_v35 = vadd.f32 %v787_v41, %v658_v10  ;;  %v1080_v10 = vunpack.c.l.bf16 %v944_v62 }
 0x2d5   :  { %v1094_v55 = vmul.f32 %v1078_v49, %v1062_v46 }
 0x2d6   :  { %v824_v39 = vpack.c.bf16 %v788_v35, %v788_v35 }
 0x2d8   :  { %v1392_v40 = vpop.eup %1391  ;;  %v840_v45 = vunpack.c.l.bf16 %v824_v39  ;;  %v962_v39 = vperm.slane %v957_v42, %v1875_v37 }
 0x2d9   :  { %v871_v47 = vpack.c.bf16 %v1392_v40, %v1392_v40 }
 0x2da   :  { %1393 = vtanh.f32 %v840_v45  ;;  %v1082_v46 = vunpack.c.l.bf16 %v962_v39 }
 0x2db   :  { %v1063_v50 = vunpack.c.l.bf16 %v871_v47  ;;  %v789_v51 = vpop.f32.mrf.mxu2 }
 0x2dc   :  { %v790_v54 = vadd.f32 %v789_v51, %v663_v1 }
 0x2dd   :  { %v1095_v56 = vmul.f32 %v1079_v48, %v1063_v50 }
 0x2de   :  { %v825_v57 = vpack.c.bf16 %v790_v54, %v790_v54 }
 0x2df   :  { %v1110_v58 = vpack.c.bf16 %v1095_v56, %v1094_v55 }
 0x2e0   :  { %v841_v59 = vunpack.c.l.bf16 %v825_v57  ;;  %v1394_v60 = vpop.eup %1393 }
 0x2e1   :  { %v872_v63 = vpack.c.bf16 %v1394_v60, %v1394_v60  ;;  %v1118_v21 = vunpack.c.l.bf16 %v1110_v58 }
 0x2e2   :  { %1395 = vtanh.f32 %v841_v59 }
 0x2e3   :  { %v792_v2 = vpop.f32.mrf.mxu2  ;;  %v1064_v61 = vunpack.c.l.bf16 %v872_v63 }
 0x2e4   :  { %v793_v4 = vadd.f32 %v792_v2, %v668_v15  ;;  %v1119_v15 = vunpack.c.h.bf16 %v1110_v58 }
 0x2e5   :  { %v1096_v22 = vmul.f32 %v1080_v10, %v1064_v61 }
 0x2e6   :  { %v826_v52 = vpack.c.bf16 %v793_v4, %v793_v4  ;;  %v1134_v29 = vadd.f32 %v1119_v15, %v1118_v21 }
 0x2e8   :  { %v1396_v0 = vpop.eup %1395  ;;  %v842_v7 = vunpack.c.l.bf16 %v826_v52 }
 0x2e9   :  { %v873_v8 = vpack.c.bf16 %v1396_v0, %v1396_v0 }
 0x2ea   :  { %1397 = vtanh.f32 %v842_v7 }
 0x2eb   :  { %v1065_v13 = vunpack.c.l.bf16 %v873_v8  ;;  %v794_v16 = vpop.f32.mrf.mxu2 }
 0x2ec   :  { %v795_v1 = vadd.f32 %v794_v16, %v1852_v14  ;;  %v971_v14 = vperm.slane %v966_v36, %v1875_v37 }
 0x2ed   :  { %v1097_v23 = vmul.f32 %v1081_v12, %v1065_v13  ;;  %v975_v12 = vpop.permute.xlu0 %974 }
 0x2ee   :  { %v827_v25 = vpack.c.bf16 %v795_v1, %v795_v1  ;;  %v1083_v45 = vunpack.c.l.bf16 %v971_v14 }
 0x2ef   :  { %v1111_v27 = vpack.c.bf16 %v1097_v23, %v1096_v22 }
 0x2f0   :  { %v843_v28 = vunpack.c.l.bf16 %v827_v25  ;;  %v1398_v31 = vpop.eup %1397 }
 0x2f1   :  { %v1120_v30 = vunpack.c.l.bf16 %v1111_v27  ;;  %v1121_v32 = vunpack.c.h.bf16 %v1111_v27  ;;  %v874_v35 = vpack.c.bf16 %v1398_v31, %v1398_v31 }
 0x2f2   :  { %1399 = vtanh.f32 %v843_v28 }
 0x2f3   :  { %v1135_v34 = vadd.f32 %v1134_v29, %v1120_v30  ;;  %v797_v41 = vpop.f32.mrf.mxu2  ;;  %v1066_v44 = vunpack.c.l.bf16 %v874_v35  ;;  %v993_v29 = vpop.permute.xlu2 %992  ;;  %v980_v30 = vperm.slane %v975_v12, %v1875_v37 }
 0x2f4   :  { %v798_v3 = vadd.f32 %v797_v41, %v1861_v18 }
 0x2f5   :  { %v1136_v33 = vadd.f32 %v1135_v34, %v1121_v32  ;;  %v1098_v49 = vmul.f32 %v1082_v46, %v1066_v44  ;;  %v1002_v41 = vpop.permute.xlu0 %1001 }
 0x2f6   :  { %v828_v63 = vpack.c.bf16 %v798_v3, %v798_v3  ;;  %v1007_v44 = vperm.slane %v1002_v41, %v1875_v37 }
 0x2f8   :  { %v1400_v43 = vpop.eup %1399  ;;  %v844_v0 = vunpack.c.l.bf16 %v828_v63 }
 0x2f9   :  { %v875_v40 = vpack.c.bf16 %v1400_v43, %v1400_v43  ;;  %v1084_v43 = vunpack.c.l.bf16 %v980_v30 }
 0x2fb   :  { %v1067_v47 = vunpack.c.l.bf16 %v875_v40  ;;  %v799_v48 = vpop.f32.mrf.mxu2 }
 0x2fc   :  { %v800_v60 = vadd.f32 %v799_v48, %v1859_v17  ;;  %v998_v48 = vperm.slane %v993_v29, %v1875_v37 }
 0x2fd   :  { %v1099_v50 = vmul.f32 %v1083_v45, %v1067_v47  ;;  %v1029_v12 = vpop.permute.xlu0 %1028 }
 0x2fe   :  { %v829_v4 = vpack.c.bf16 %v800_v60, %v800_v60 }
 0x2ff   :  { %v1112_v51 = vpack.c.bf16 %v1099_v50, %v1098_v49 }
 0x300   :  { %v845_v52 = vunpack.c.l.bf16 %v829_v4 }
 0x301   :  { %v1122_v54 = vunpack.c.l.bf16 %v1112_v51  ;;  %v1123_v55 = vunpack.c.h.bf16 %v1112_v51 }
 0x302   :  { %1401 = vtanh.f32 %v845_v52 }
 0x303   :  { %v1137_v56 = vadd.f32 %v1136_v33, %v1122_v54  ;;  %v802_v57 = vpop.f32.mrf.mxu2  ;;  %1403 = vtanh.f32 %v844_v0 }
 0x304   :  { %v803_v62 = vadd.f32 %v802_v57, %v1857_v11 }
 0x305   :  { %v1886_v58 = vadd.f32 %v1137_v56, %v1123_v55 }
 0x306   :  { %v830_v61 = vpack.c.bf16 %v803_v62, %v803_v62 }
 0x308   :  { %v846_v18 = vunpack.c.l.bf16 %v830_v61  ;;  %v1402_v1 = vpop.eup %1401 }
 0x309   :  { %v1404_v15 = vpop.eup %1403  ;;  %v877_v23 = vpack.c.bf16 %v1402_v1, %v1402_v1 }
 0x30a   :  { %v876_v27 = vpack.c.bf16 %v1404_v15, %v1404_v15 }
 0x30b   :  { %v804_v59 = vpop.f32.mrf.mxu2  ;;  %v1069_v31 = vunpack.c.l.bf16 %v877_v23 }
 0x30c   :  { %v805_v5 = vadd.f32 %v804_v59, %v1867_v24  ;;  %v984_v24 = vpop.permute.xlu1 %983  ;;  %v1068_v33 = vunpack.c.l.bf16 %v876_v27  ;;  %v1020_v59 = vpop.permute.xlu2 %1019 }
 0x30d   :  { %v1025_v3 = vperm.slane %v1020_v59, %v1875_v37 }
 0x30e   :  { %v831_v7 = vpack.c.bf16 %v805_v5, %v805_v5  ;;  %v1100_v49 = vmul.f32 %v1084_v43, %v1068_v33 }
 0x310   :  { %v847_v10 = vunpack.c.l.bf16 %v831_v7 }
 0x312   :  { %1405 = vtanh.f32 %v847_v10 }
 0x313   :  { %v807_v2 = vpop.f32.mrf.mxu2  ;;  %1407 = vtanh.f32 %v846_v18 }
 0x314   :  { %v808_v17 = vadd.f32 %v807_v2, %v1865_v20  ;;  %v1011_v14 = vpop.permute.xlu1 %1010  ;;  %v1086_v2 = vunpack.c.l.bf16 %v998_v48 }
 0x315   :  { %v1016_v5 = vperm.slane %v1011_v14, %v1875_v37  ;;  %v1047_v14 = vpop.permute.xlu2 %1046 }
 0x316   :  { %v832_v21 = vpack.c.bf16 %v808_v17, %v808_v17  ;;  %v1089_v17 = vunpack.c.l.bf16 %v1025_v3 }
 0x318   :  { %v848_v25 = vunpack.c.l.bf16 %v832_v21  ;;  %v1406_v20 = vpop.eup %1405 }
 0x319   :  { %v1408_v34 = vpop.eup %1407  ;;  %v879_v35 = vpack.c.bf16 %v1406_v20, %v1406_v20 }
 0x31a   :  { %v878_v45 = vpack.c.bf16 %v1408_v34, %v1408_v34 }
 0x31b   :  { %v809_v6 = vpop.f32.mrf.mxu2  ;;  %v1071_v50 = vunpack.c.l.bf16 %v879_v35 }
 0x31c   :  { %v810_v8 = vadd.f32 %v809_v6, %v1863_v19  ;;  %v989_v19 = vperm.slane %v984_v24, %v1875_v37  ;;  %v1070_v55 = vunpack.c.l.bf16 %v878_v45 }
 0x31e   :  { %v833_v13 = vpack.c.bf16 %v810_v8, %v810_v8  ;;  %v1085_v42 = vunpack.c.l.bf16 %v989_v19  ;;  %v1102_v0 = vmul.f32 %v1086_v2, %v1070_v55  ;;  %v1038_v8 = vpop.permute.xlu1 %1037 }
 0x31f   :  { %v1043_v1 = vperm.slane %v1038_v8, %v1875_v37  ;;  %v1156_v8 = vstv %s1923_s8 }
 0x320   :  { %v849_v22 = vunpack.c.l.bf16 %v833_v13  ;;  %v1101_v40 = vmul.f32 %v1085_v42, %v1069_v31 }
 0x321   :  { %v1091_v29 = vunpack.c.l.bf16 %v1043_v1 }
 0x322   :  { %1409 = vtanh.f32 %v849_v22  ;;  %v1113_v54 = vpack.c.bf16 %v1101_v40, %v1100_v49  ;;  %v1034_v22 = vperm.slane %v1029_v12, %v1875_v37  ;;  %v1052_v40 = vperm.slane %v1047_v14, %v1875_v37 }
 0x323   :  { %v812_v16 = vpop.f32.mrf.mxu2  ;;  %1411 = vtanh.f32 %v848_v25 }
 0x324   :  { %v813_v11 = vadd.f32 %v812_v16, %v1873_v38  ;;  %v1124_v6 = vunpack.c.l.bf16 %v1113_v54  ;;  %v1088_v16 = vunpack.c.l.bf16 %v1016_v5  ;;  %v1125_v25 = vunpack.c.h.bf16 %v1113_v54 }
 0x325   :  { %v1090_v41 = vunpack.c.l.bf16 %v1034_v22 }
 0x326   :  { %v834_v28 = vpack.c.bf16 %v813_v11, %v813_v11  ;;  %v1139_v24 = vadd.f32 %v1886_v58, %v1124_v6 }
 0x328   :  { %v850_v36 = vunpack.c.l.bf16 %v834_v28  ;;  %v1410_v46 = vpop.eup %1409  ;;  %v1140_v30 = vadd.f32 %v1139_v24, %v1125_v25 }
 0x329   :  { %v1412_v51 = vpop.eup %1411  ;;  %v881_v56 = vpack.c.bf16 %v1410_v46, %v1410_v46 }
 0x32a   :  { %1413 = vtanh.f32 %v850_v36  ;;  %v880_v63 = vpack.c.bf16 %v1412_v51, %v1412_v51 }
 0x32b   :  { %v814_v32 = vpop.f32.mrf.mxu2  ;;  %v1073_v7 = vunpack.c.l.bf16 %v881_v56 }
 0x32c   :  { %v815_v38 = vadd.f32 %v814_v32, %v1871_v26  ;;  %v1087_v26 = vunpack.c.l.bf16 %v1007_v44  ;;  %v1072_v13 = vunpack.c.l.bf16 %v880_v63 }
 0x32d   :  { %v1105_v21 = vmul.f32 %v1089_v17, %v1073_v7 }
 0x32e   :  { %v835_v39 = vpack.c.bf16 %v815_v38, %v815_v38  ;;  %v1103_v4 = vmul.f32 %v1087_v26, %v1071_v50  ;;  %v1104_v27 = vmul.f32 %v1088_v16, %v1072_v13  ;;  %v1092_v26 = vunpack.c.l.bf16 %v1052_v40 }
 0x330   :  { %v851_v47 = vunpack.c.l.bf16 %v835_v39  ;;  %v1414_v62 = vpop.eup %1413  ;;  %v1114_v18 = vpack.c.bf16 %v1103_v4, %v1102_v0  ;;  %v1115_v31 = vpack.c.bf16 %v1105_v21, %v1104_v27 }
 0x331   :  { %v882_v11 = vpack.c.bf16 %v1414_v62, %v1414_v62 }
 0x332   :  { %1415 = vtanh.f32 %v851_v47  ;;  %v1126_v19 = vunpack.c.l.bf16 %v1114_v18  ;;  %v1127_v33 = vunpack.c.h.bf16 %v1114_v18  ;;  %v1128_v35 = vunpack.c.l.bf16 %v1115_v31 }
 0x333   :  { %v817_v57 = vpop.f32.mrf.mxu2  ;;  %v1074_v32 = vunpack.c.l.bf16 %v882_v11  ;;  %v1129_v48 = vunpack.c.h.bf16 %v1115_v31 }
 0x334   :  { %v818_v60 = vadd.f32 %v817_v57, %v1869_v9  ;;  %v1141_v58 = vadd.f32 %v1140_v30, %v1126_v19 }
 0x335   :  { %v1106_v36 = vmul.f32 %v1090_v41, %v1074_v32 }
 0x336   :  { %v836_v52 = vpack.c.bf16 %v818_v60, %v818_v60  ;;  %v1142_v39 = vadd.f32 %v1141_v58, %v1127_v33 }
 0x338   :  { %v1416_v61 = vpop.eup %1415  ;;  %v852_v10 = vunpack.c.l.bf16 %v836_v52  ;;  %v1143_v46 = vadd.f32 %v1142_v39, %v1128_v35 }
 0x339   :  { %v883_v9 = vpack.c.bf16 %v1416_v61, %v1416_v61 }
 0x33a   :  { %1417 = vtanh.f32 %v852_v10  ;;  %v1144_v55 = vadd.f32 %v1143_v46, %v1129_v48 }
 0x33b   :  { %v819_v15 = vpop.f32.mrf.mxu2  ;;  %v1075_v28 = vunpack.c.l.bf16 %v883_v9 }
 0x33c   :  { %v820_v23 = vadd.f32 %v819_v15, %v1879_v53  ;;  %v1056_v53 = vpop.permute.xlu0 %1055 }
 0x33d   :  { %v1107_v38 = vmul.f32 %v1091_v29, %v1075_v28  ;;  %v1061_v45 = vperm.slane %v1056_v53, %v1875_v37 }
 0x33e   :  { %v837_v20 = vpack.c.bf16 %v820_v23, %v820_v23 }
 0x33f   :  { %v1116_v43 = vpack.c.bf16 %v1107_v38, %v1106_v36  ;;  %v1093_v54 = vunpack.c.l.bf16 %v1061_v45 }
 0x340   :  { %v853_v34 = vunpack.c.l.bf16 %v837_v20  ;;  %v1418_v42 = vpop.eup %1417 }
 0x341   :  { %v884_v44 = vpack.c.bf16 %v1418_v42, %v1418_v42  ;;  %v1130_v49 = vunpack.c.l.bf16 %v1116_v43  ;;  %v1131_v2 = vunpack.c.h.bf16 %v1116_v43 }
 0x342   :  { %1419 = vtanh.f32 %v853_v34 }
 0x343   :  { %v1076_v50 = vunpack.c.l.bf16 %v884_v44  ;;  %v1145_v57 = vadd.f32 %v1144_v55, %v1130_v49 }
 0x345   :  { %v1108_v59 = vmul.f32 %v1092_v26, %v1076_v50  ;;  %v1146_v4 = vadd.f32 %v1145_v57, %v1131_v2 }
 0x348   :  { %v1420_v47 = vpop.eup %1419 }
 0x349   :  { %v885_v51 = vpack.c.bf16 %v1420_v47, %v1420_v47 }
 0x34b   :  { %v1077_v56 = vunpack.c.l.bf16 %v885_v51 }
 0x34d   :  { %v1109_v60 = vmul.f32 %v1093_v54, %v1077_v56 }
 0x34f   :  { %v1117_v3 = vpack.c.bf16 %v1109_v60, %v1108_v59 }
 0x351   :  { %v1132_v63 = vunpack.c.l.bf16 %v1117_v3  ;;  %v1133_v5 = vunpack.c.h.bf16 %v1117_v3 }
 0x353   :  { %v1147_v52 = vadd.f32 %v1146_v4, %v1132_v63 }
 0x355   :  { %v1148_v37 = vadd.f32 %v1147_v52, %v1133_v5 }
 0x357   :  { %v1149_v62 = vrot.slane %v1148_v37, 4 }
 0x359   :  { %v1150_v6 = vadd.f32 %v1149_v62, %v1148_v37 }
 0x35b   :  { %v1151_v0 = vrot.slane %v1150_v6, 2 }
 0x35d   :  { %v1152_v7 = vadd.f32 %v1151_v0, %v1150_v6 }
 0x35f   :  { %v1153_v61 = vrot.slane %v1152_v7, 1 }
 0x361   :  { %v1154_v10 = vadd.f32 %v1153_v61, %v1152_v7 }
 0x363   :  { %v1157_v17 = vadd.f32 %v1156_v8, %v1154_v10 }
 0x365   :  { %1158 = vst [vmem:[#allocation3] sm:$0x1] %v1157_v17 }
 0x366   :  { %1169 = dma.vmem_to_hbm [thread:$0]  %s1165_s4, 16, %s1167_s28, [#allocation4]  }
 0x367   :  { %1445 = dma.done.wait [#allocation4], 16  }
 0x368   :  { %1446 = vsyncadd [#allocation4], 4294967280 }
 0x369   :  { %1174 = vsyncpa [#allocation4], 1 }

</bundles_post_ra>
